<compile_context>
chip_gen: v7x
topology: tpu7x:2x2x1
jax: 0.10.0
libtpu: 0.0.40
codegen_flags: <defaults>
</compile_context>

<pallas_src>
import math
from functools import partial

import jax
import jax.numpy as jnp
from jax.experimental import pallas as pl
from jax.experimental.pallas import tpu as pltpu


def _mlp_kernel(x_ref, w_ref, cam_ref, out_ref, acc_ref, *, S, TS, TB, inv_S):
    # x_ref  : (TB, Cin, TS)   input tile (channels on sublanes, spatial on lanes)
    # w_ref  : (Cout, Cin)     1x1 conv weight, resident across the whole grid
    # cam_ref: (TB, Cout, TS)  conv output tile (lane-dense: last dim = spatial)
    # out_ref: (TB, 1, Cout)   pooled output block, resident across the S axis
    # acc_ref: (TB, Cout) f32  scratch accumulator for the spatial sum
    s_idx = pl.program_id(1)
    n_s = pl.num_programs(1)

    @pl.when(s_idx == 0)
    def _():
        acc_ref[...] = jnp.zeros_like(acc_ref)

    w = w_ref[...]

    # 1x1 conv == (Cout, Cin) @ (Cin, TS) matmul on the MXU, one per folded
    # batch row.  TB is a small static count, so this Python loop is unrolled
    # and keeps the lane axis on the spatial dim (no in-kernel transposes).
    cams = []
    for i in range(TB):
        cam_i = jnp.dot(w, x_ref[i], preferred_element_type=jnp.float32)  # (Cout, TS)
        cam_ref[i] = cam_i.astype(cam_ref.dtype)
        cams.append(cam_i)

    def _accumulate(mask_pad):
        for i, cam_i in enumerate(cams):
            c = cam_i
            if mask_pad:
                # Ragged last spatial tile: drop padded lanes from the pooling sum.
                lane = jax.lax.broadcasted_iota(jnp.int32, c.shape, 1)
                c = jnp.where(s_idx * TS + lane < S, c, 0.0)
            acc_ref[pl.ds(i, 1), :] += jnp.sum(c, axis=1)[None, :]

    if S % TS != 0:
        # Gate the iota+mask so it only executes on the single ragged last tile.
        @pl.when(s_idx != n_s - 1)
        def _():
            _accumulate(False)

        @pl.when(s_idx == n_s - 1)
        def _():
            _accumulate(True)
    else:
        _accumulate(False)

    @pl.when(s_idx == n_s - 1)
    def _():
        # AdaptiveAvgPool2d((1,1)): finalize the mean with a precomputed 1/S.
        for i in range(TB):
            out_ref[i] = (acc_ref[pl.ds(i, 1), :] * inv_S).astype(out_ref.dtype)


def _vmem_capacity_bytes():
    try:
        info = pltpu.get_tpu_info()
        cap = getattr(info, "vmem_capacity_bytes", None)
        if cap:
            return int(cap)
    except Exception:
        pass
    # Conservative fallback (v7x-sized VMEM); safe on every generation.
    return 64 * 1024 * 1024


def _select_tiles(B, Cin, Cout, S, itemsize, max_spatial_tile, max_batch_tile):
    """Pick (TB, TS, vmem_limit_bytes) from the device's VMEM capacity."""
    vmem_cap = _vmem_capacity_bytes()
    # Budget for the pipelined working set; leave headroom for compiler scratch.
    tile_budget = int(vmem_cap * 0.55)

    def step_bytes(TB, TS):
        x_b = 2 * TB * Cin * TS * itemsize      # double-buffered input tiles
        cam_b = 2 * TB * Cout * TS * itemsize   # double-buffered cam tiles
        w_b = 2 * Cout * Cin * itemsize         # resident weight (count 2x to be safe)
        out_b = 2 * TB * Cout * itemsize
        acc_b = TB * Cout * 4
        return x_b + cam_b + w_b + out_b + acc_b

    full_s_ok = step_bytes(1, S) <= tile_budget and (
        max_spatial_tile is None or S <= max_spatial_tile
    )

    if full_s_ok:
        # Small/medium feature maps: whole (Cin, S) slab per batch row, folding
        # several batch rows per grid step to amortize the fixed step overhead.
        TS = S
        tb_cap = B if max_batch_tile is None else min(B, max_batch_tile)
        tb_cap = min(tb_cap, 16)  # keep the unrolled in-kernel loop short
        TB = 1
        for cand in range(tb_cap, 0, -1):
            if B % cand == 0 and step_bytes(cand, S) <= tile_budget:
                TB = cand
                break
    else:
        TB = 1
        ts_cap = 4096 if max_spatial_tile is None else max_spatial_tile
        ts_hi = max(128, (min(ts_cap, S) // 128) * 128)
        TS = 128
        for cand in range(ts_hi, 127, -128):
            if step_bytes(1, cand) <= tile_budget:
                TS = cand
                break
        if S % TS != 0:
            # Prefer a 128-multiple divisor of S (>= half the chosen tile) so
            # the ragged-last-tile path is avoided entirely when possible.
            for cand in range(TS, max(128, TS // 2) - 1, -128):
                if S % cand == 0:
                    TS = cand
                    break
        TS = min(TS, S)

    fp = step_bytes(TB, TS)
    vmem_limit = min(int(vmem_cap * 0.9), max(fp + (8 << 20), 32 << 20))
    return TB, TS, int(vmem_limit)


def mlp_forward(x_nchw: jax.Array, weight_oihw: jax.Array, *,
                max_spatial_tile: int | None = None,
                max_batch_tile: int | None = None):
    """x_nchw: (B, Cin, H, W); weight_oihw: (Cout, Cin, 1, 1). Returns (cam, outs)."""
    B, Cin, H, W = x_nchw.shape
    Cout = weight_oihw.shape[0]
    S = H * W

    # Free reshapes only (no transposes): keep the NCHW-derived layout.
    x_bcs = x_nchw.reshape(B, Cin, S)
    w_oc = weight_oihw.reshape(Cout, Cin)

    itemsize = jnp.dtype(x_nchw.dtype).itemsize
    TB, TS, vmem_limit = _select_tiles(
        B, Cin, Cout, S, itemsize, max_spatial_tile, max_batch_tile
    )
    grid = (B // TB, pl.cdiv(S, TS))

    kernel = partial(_mlp_kernel, S=S, TS=TS, TB=TB, inv_S=float(1.0 / S))

    cam_bcs, outs3 = pl.pallas_call(
        kernel,
        grid=grid,
        out_shape=(
            jax.ShapeDtypeStruct((B, Cout, S), x_nchw.dtype),
            jax.ShapeDtypeStruct((B, 1, Cout), x_nchw.dtype),
        ),
        in_specs=[
            pl.BlockSpec((TB, Cin, TS), lambda b, s: (b, 0, s)),
            # Weight block index never changes -> DMA'd once, stays resident.
            # (Single-buffering it via pipeline_mode=pl.Buffered(1) would only
            #  reclaim one redundant ~Cout*Cin buffer; skipped for portability.)
            pl.BlockSpec((Cout, Cin), lambda b, s: (0, 0)),
        ],
        out_specs=(
            pl.BlockSpec((TB, Cout, TS), lambda b, s: (b, 0, s)),
            pl.BlockSpec((TB, 1, Cout), lambda b, s: (b, 0, 0)),
        ),
        scratch_shapes=[pltpu.VMEM((TB, Cout), jnp.float32)],
        compiler_params=pltpu.CompilerParams(
            # NOTE: the cross-S accumulator relies on the batch axis being the
            # outer grid axis and S ("arbitrary") being the inner one.
            dimension_semantics=("parallel", "arbitrary"),
            vmem_limit_bytes=vmem_limit,
        ),
    )(x_bcs, w_oc)

    cam = cam_bcs.reshape(B, Cout, H, W)  # free
    outs = outs3.reshape(B, Cout)          # free
    return cam, outs


def make_xavier_uniform_weight(key, out_chan, in_chan, dtype=jnp.float32):
    # torch.nn.init.xavier_uniform_ on a (out, in, 1, 1) conv weight:
    # fan_in = in_chan, fan_out = out_chan, bound = sqrt(6 / (fan_in + fan_out))
    bound = math.sqrt(6.0 / (in_chan + out_chan))
    return jax.random.uniform(
        key, (out_chan, in_chan, 1, 1), dtype=dtype, minval=-bound, maxval=bound
    )


def _reference(x, weight):
    Cout, Cin = weight.shape[0], weight.shape[1]
    cam = jnp.einsum("bchw,oc->bohw", x, weight.reshape(Cout, Cin))
    outs = jnp.mean(cam, axis=(2, 3))
    return cam, outs


if __name__ == "__main__":
    # Small shapes consistent with the module (in_chan/out_chan scaled down).
    B, Cin, Cout, H, W = 2, 32, 11, 8, 8

    key = jax.random.PRNGKey(0)
    kx, kw = jax.random.split(key)
    x = jax.random.normal(kx, (B, Cin, H, W), dtype=jnp.float32)
    weight = make_xavier_uniform_weight(kw, Cout, Cin)

    # 1) Default path: full-S slab with batch folding (TB=2, single grid step).
    cam, outs = jax.jit(mlp_forward)(x, weight)
    jax.block_until_ready((cam, outs))
    cam_ref, outs_ref = _reference(x, weight)
    assert cam.shape == (B, Cout, H, W) and outs.shape == (B, Cout)
    assert jnp.allclose(cam, cam_ref, atol=1e-5, rtol=1e-5)
    assert jnp.allclose(outs, outs_ref, atol=1e-5, rtol=1e-5)

    # 2) Multi-tile accumulator + ragged last tile (S = 144, TS forced to 128).
    H2 = W2 = 12
    x2 = jax.random.normal(jax.random.PRNGKey(1), (B, Cin, H2, W2), dtype=jnp.float32)
    f2 = jax.jit(lambda a, b: mlp_forward(a, b, max_spatial_tile=128, max_batch_tile=1))
    cam2, outs2 = f2(x2, weight)
    jax.block_until_ready((cam2, outs2))
    cam2_ref, outs2_ref = _reference(x2, weight)
    assert jnp.allclose(cam2, cam2_ref, atol=1e-5, rtol=1e-5)
    assert jnp.allclose(outs2, outs2_ref, atol=1e-5, rtol=1e-5)

    # 3) Multi-tile, evenly-divisible spatial path (S = 256, TS = 128, no mask).
    H3 = W3 = 16
    x3 = jax.random.normal(jax.random.PRNGKey(2), (B, Cin, H3, W3), dtype=jnp.float32)
    f3 = jax.jit(lambda a, b: mlp_forward(a, b, max_spatial_tile=128))
    cam3, outs3 = f3(x3, weight)
    jax.block_until_ready((cam3, outs3))
    cam3_ref, outs3_ref = _reference(x3, weight)
    assert jnp.allclose(cam3, cam3_ref, atol=1e-5, rtol=1e-5)
    assert jnp.allclose(outs3, outs3_ref, atol=1e-5, rtol=1e-5)

    print("KERNEL_OK")
</pallas_src>

<mosaic_0001>
module attributes {stable_mosaic.version = 11 : i64} {
  func.func @_mlp_kernel(%arg0: i32, %arg1: i32, %arg2: memref<2x32x64xf32, #tpu.memory_space<vmem>>, %arg3: memref<11x32xf32, #tpu.memory_space<vmem>>, %arg4: memref<2x11x64xf32, #tpu.memory_space<vmem>>, %arg5: memref<2x1x11xf32, #tpu.memory_space<vmem>>, %arg6: memref<2x11xf32, #tpu.memory_space<vmem>>) attributes {dimension_semantics = [#tpu.dimension_semantics<parallel>, #tpu.dimension_semantics<arbitrary>], iteration_bounds = array<i64: 1, 1>, scalar_prefetch = 0 : i64, scratch_operands = 1 : i64, tpu.core_type = #tpu.core_type<tc>, window_params = [{transform_indices = @transform_0, window_bounds = array<i64: 2, 32, 64>}, {pipeline_mode = #tpu.pipeline_mode<synchronous>, transform_indices = @transform_1, window_bounds = array<i64: 11, 32>}, {transform_indices = @transform_2, window_bounds = array<i64: 2, 11, 64>}, {transform_indices = @transform_3, window_bounds = array<i64: 2, 1, 11>}]} {
    %c0_i32 = arith.constant 0 : i32
    %0 = arith.cmpi eq, %arg1, %c0_i32 : i32
    %1 = arith.extui %0 : i1 to i32
    %c0_i32_0 = arith.constant 0 : i32
    %2 = arith.cmpi ne, %1, %c0_i32_0 : i32
    scf.if %2 {
      %cst_26 = arith.constant 0.000000e+00 : f32
      %29 = vector.broadcast %cst_26 : f32 to vector<2x11xf32>
      %c0_27 = arith.constant 0 : index
      %c0_28 = arith.constant 0 : index
      %30 = vector.load %arg6[%c0_27, %c0_28] : memref<2x11xf32, #tpu.memory_space<vmem>>, vector<2x11xf32>
      tpu.vector_store %arg6[%c0_27, %c0_28], %29 {strides = array<i32>} : memref<2x11xf32, #tpu.memory_space<vmem>>, vector<2x11xf32>,
    } else {
    }
    %c0 = arith.constant 0 : index
    %c0_1 = arith.constant 0 : index
    %3 = vector.load %arg3[%c0, %c0_1] : memref<11x32xf32, #tpu.memory_space<vmem>>, vector<11x32xf32>
    %c0_2 = arith.constant 0 : index
    %c0_3 = arith.constant 0 : index
    %c0_4 = arith.constant 0 : index
    %4 = vector.load %arg2[%c0_2, %c0_3, %c0_4] : memref<2x32x64xf32, #tpu.memory_space<vmem>>, vector<1x32x64xf32>
    %5 = vector.shape_cast %4 : vector<1x32x64xf32> to vector<32x64xf32>
    %cst = arith.constant dense<0.000000e+00> : vector<11x64xf32>
    %6 = tpu.matmul %3, %5, %cst {dimension_numbers = #tpu.dot_dimension_numbers<[1], [0], [0], [1], [0, 0, 1, 1], [], []>} : vector<11x32xf32>, vector<32x64xf32>, vector<11x64xf32> -> vector<11x64xf32>
    %c0_5 = arith.constant 0 : index
    %c0_6 = arith.constant 0 : index
    %c0_7 = arith.constant 0 : index
    %7 = vector.load %arg4[%c0_5, %c0_6, %c0_7] : memref<2x11x64xf32, #tpu.memory_space<vmem>>, vector<1x11x64xf32>
    %8 = vector.shape_cast %7 : vector<1x11x64xf32> to vector<11x64xf32>
    %9 = vector.shape_cast %6 : vector<11x64xf32> to vector<1x11x64xf32>
    tpu.vector_store %arg4[%c0_5, %c0_6, %c0_7], %9 {strides = array<i32>} : memref<2x11x64xf32, #tpu.memory_space<vmem>>, vector<1x11x64xf32>,
    %c1 = arith.constant 1 : index
    %c0_8 = arith.constant 0 : index
    %c0_9 = arith.constant 0 : index
    %10 = vector.load %arg2[%c1, %c0_8, %c0_9] : memref<2x32x64xf32, #tpu.memory_space<vmem>>, vector<1x32x64xf32>
    %11 = vector.shape_cast %10 : vector<1x32x64xf32> to vector<32x64xf32>
    %cst_10 = arith.constant dense<0.000000e+00> : vector<11x64xf32>
    %12 = tpu.matmul %3, %11, %cst_10 {dimension_numbers = #tpu.dot_dimension_numbers<[1], [0], [0], [1], [0, 0, 1, 1], [], []>} : vector<11x32xf32>, vector<32x64xf32>, vector<11x64xf32> -> vector<11x64xf32>
    %c1_11 = arith.constant 1 : index
    %c0_12 = arith.constant 0 : index
    %c0_13 = arith.constant 0 : index
    %13 = vector.load %arg4[%c1_11, %c0_12, %c0_13] : memref<2x11x64xf32, #tpu.memory_space<vmem>>, vector<1x11x64xf32>
    %14 = vector.shape_cast %13 : vector<1x11x64xf32> to vector<11x64xf32>
    %15 = vector.shape_cast %12 : vector<11x64xf32> to vector<1x11x64xf32>
    tpu.vector_store %arg4[%c1_11, %c0_12, %c0_13], %15 {strides = array<i32>} : memref<2x11x64xf32, #tpu.memory_space<vmem>>, vector<1x11x64xf32>,
    %c0_14 = arith.constant 0 : index
    %c0_15 = arith.constant 0 : index
    %16 = vector.load %arg6[%c0_14, %c0_15] : memref<2x11xf32, #tpu.memory_space<vmem>>, vector<1x11xf32>
    %cst_16 = arith.constant dense<0.000000e+00> : vector<11xf32>
    %17 = vector.multi_reduction <add>, %6, %cst_16 [1] : vector<11x64xf32> to vector<11xf32>
    %18 = vector.shape_cast %17 : vector<11xf32> to vector<1x11xf32>
    %19 = arith.addf %16, %18 : vector<1x11xf32>
    %c0_17 = arith.constant 0 : index
    %c0_18 = arith.constant 0 : index
    %20 = vector.load %arg6[%c0_17, %c0_18] : memref<2x11xf32, #tpu.memory_space<vmem>>, vector<1x11xf32>
    tpu.vector_store %arg6[%c0_17, %c0_18], %19 {strides = array<i32>} : memref<2x11xf32, #tpu.memory_space<vmem>>, vector<1x11xf32>,
    %c1_19 = arith.constant 1 : index
    %c0_20 = arith.constant 0 : index
    %21 = vector.load %arg6[%c1_19, %c0_20] : memref<2x11xf32, #tpu.memory_space<vmem>>, vector<1x11xf32>
    %cst_21 = arith.constant dense<0.000000e+00> : vector<11xf32>
    %22 = vector.multi_reduction <add>, %12, %cst_21 [1] : vector<11x64xf32> to vector<11xf32>
    %23 = vector.shape_cast %22 : vector<11xf32> to vector<1x11xf32>
    %24 = arith.addf %21, %23 : vector<1x11xf32>
    %c1_22 = arith.constant 1 : index
    %c0_23 = arith.constant 0 : index
    %25 = vector.load %arg6[%c1_22, %c0_23] : memref<2x11xf32, #tpu.memory_space<vmem>>, vector<1x11xf32>
    tpu.vector_store %arg6[%c1_22, %c0_23], %24 {strides = array<i32>} : memref<2x11xf32, #tpu.memory_space<vmem>>, vector<1x11xf32>,
    %c0_i32_24 = arith.constant 0 : i32
    %26 = arith.cmpi eq, %arg1, %c0_i32_24 : i32
    %27 = arith.extui %26 : i1 to i32
    %c0_i32_25 = arith.constant 0 : i32
    %28 = arith.cmpi ne, %27, %c0_i32_25 : i32
    scf.if %28 {
      %c0_26 = arith.constant 0 : index
      %c0_27 = arith.constant 0 : index
      %29 = vector.load %arg6[%c0_26, %c0_27] : memref<2x11xf32, #tpu.memory_space<vmem>>, vector<1x11xf32>
      %cst_28 = arith.constant 1.562500e-02 : f32
      %30 = vector.broadcast %cst_28 : f32 to vector<1x11xf32>
      %31 = arith.mulf %29, %30 : vector<1x11xf32>
      %c0_29 = arith.constant 0 : index
      %c0_30 = arith.constant 0 : index
      %c0_31 = arith.constant 0 : index
      %32 = vector.load %arg5[%c0_29, %c0_30, %c0_31] : memref<2x1x11xf32, #tpu.memory_space<vmem>>, vector<1x1x11xf32>
      %33 = vector.shape_cast %32 : vector<1x1x11xf32> to vector<1x11xf32>
      %34 = vector.shape_cast %31 : vector<1x11xf32> to vector<1x1x11xf32>
      tpu.vector_store %arg5[%c0_29, %c0_30, %c0_31], %34 {strides = array<i32>} : memref<2x1x11xf32, #tpu.memory_space<vmem>>, vector<1x1x11xf32>,
      %c1_32 = arith.constant 1 : index
      %c0_33 = arith.constant 0 : index
      %35 = vector.load %arg6[%c1_32, %c0_33] : memref<2x11xf32, #tpu.memory_space<vmem>>, vector<1x11xf32>
      %cst_34 = arith.constant 1.562500e-02 : f32
      %36 = vector.broadcast %cst_34 : f32 to vector<1x11xf32>
      %37 = arith.mulf %35, %36 : vector<1x11xf32>
      %c1_35 = arith.constant 1 : index
      %c0_36 = arith.constant 0 : index
      %c0_37 = arith.constant 0 : index
      %38 = vector.load %arg5[%c1_35, %c0_36, %c0_37] : memref<2x1x11xf32, #tpu.memory_space<vmem>>, vector<1x1x11xf32>
      %39 = vector.shape_cast %38 : vector<1x1x11xf32> to vector<1x11xf32>
      %40 = vector.shape_cast %37 : vector<1x11xf32> to vector<1x1x11xf32>
      tpu.vector_store %arg5[%c1_35, %c0_36, %c0_37], %40 {strides = array<i32>} : memref<2x1x11xf32, #tpu.memory_space<vmem>>, vector<1x1x11xf32>,
    } else {
    }
    return
  }
  func.func @transform_0(%arg0: i32, %arg1: i32) -> (i32, i32, i32) {
    %c0_i32 = arith.constant 0 : i32
    %c0_i32_0 = arith.constant 0 : i32
    return %arg0, %c0_i32, %arg1 : i32, i32, i32
  }
  func.func @transform_1(%arg0: i32, %arg1: i32) -> (i32, i32) {
    %c0_i32 = arith.constant 0 : i32
    %c0_i32_0 = arith.constant 0 : i32
    %c0_i32_1 = arith.constant 0 : i32
    return %c0_i32, %c0_i32_0 : i32, i32
  }
  func.func @transform_2(%arg0: i32, %arg1: i32) -> (i32, i32, i32) {
    %c0_i32 = arith.constant 0 : i32
    %c0_i32_0 = arith.constant 0 : i32
    return %arg0, %c0_i32, %arg1 : i32, i32, i32
  }
  func.func @transform_3(%arg0: i32, %arg1: i32) -> (i32, i32, i32) {
    %c0_i32 = arith.constant 0 : i32
    %c0_i32_0 = arith.constant 0 : i32
    %c0_i32_1 = arith.constant 0 : i32
    return %arg0, %c0_i32, %c0_i32_0 : i32, i32, i32
  }
}

</mosaic_0001>

<bundles_post_ra>
// kernel: mlp_forward.1
= control target key start
LH: loop header
LB: loop body
LE: loop exit
PB: predicated region body
PF: predicated region fallthrough
CT: control target
= control target key end

     0   :  { %vm26_vm0 = vcmask 261120   ;;  %s442_s0 = inlined_call_operand.vmem [shape: f32[2,32,64], index: 0, kind: input, shape index: {}]   ;;  %s443_s1 = inlined_call_operand.vmem [shape: f32[11,32], index: 1, kind: input, shape index: {}]   ;;  %s444_s2 = inlined_call_operand.vmem [shape: f32[2,11,64], index: 2, kind: output, shape index: {0}]   ;;  %s445_s3 = inlined_call_operand.hbm [shape: f32[2,1,11], index: 3, kind: output, shape index: {1}]  }
   0x1   :  { %v22_v0 = vld [vmem:[%s442_s0] sm:$0xff]  ;;  %v23_v1 = vld [vmem:[%s442_s0 + $0x8] sm:$0xff]  ;;  %v24_v5 = vld [vmem:[%s442_s0 + $0x10] sm:$0xff] }
   0x2   :  { %v274_v2 = vld [vmem:[%s442_s0 + $0x20] sm:$0xff]  ;;  %v316_v3 = vpack.c.bf16 %v23_v1, %v22_v0  ;;  %v275_v4 = vld [vmem:[%s442_s0 + $0x28] sm:$0xff]  ;;  %v25_v6 = vld [vmem:[%s442_s0 + $0x18] sm:$0xff] }
   0x3   :  { %v324_v7 = vpack.c.bf16 %v275_v4, %v274_v2  ;;  %v320_v8 = vpack.c.bf16 %v25_v6, %v24_v5  ;;  %v276_v9 = vld [vmem:[%s442_s0 + $0x30] sm:$0xff]  ;;  %v277_v10 = vld [vmem:[%s442_s0 + $0x38] sm:$0xff]  ;;  %v20_v11 = vld [vmem:[%s443_s1] sm:$0xff] }
   0x4   :  { %317 = vmatprep.subr.bf16.mxu0 %v316_v3  ;;  %v328_v12 = vpack.c.bf16 %v277_v10, %v276_v9  ;;  %302 = vmatprep.mubr.msk.f32.mxu0 %vm26_vm0, %v20_v11 }
   0x5   :  { %9 = vsyncpa [#allocation4], 0  ;;  %325 = vmatprep.subr.bf16.mxu1 %v324_v7  ;;  %319 = vmatpush3.bf16.msra.mxu0 %v316_v3  ;;  %v21_v13 = vld [vmem:[%s443_s1 + $0x8] sm:$0x7]  ;;  %vm110_vm1 = vcmask 518144   ;;  %vm108_vm2 = vcmask 523264   ;;  %v204_v23 = vlaneseq }
   0x6   :  { %327 = vmatpush3.bf16.msra.mxu1 %v324_v7  ;;  %321 = vmatprep.subr.bf16.mxu0 %v320_v8  ;;  %vm18_vm3 = vcmask 82944   ;;  %v360_v22 = vmov 0.0   ;;  %vm215_vm4 = vcmask 130112   ;;  %vm219_vm5 = vcmask 81920  }
   0x7   :  { %329 = vmatprep.subr.bf16.mxu1 %v328_v12  ;;  %313 = vmatprep.mubr.msk.f32.mxu1 %vm26_vm0, %v20_v11  ;;  %19 = vst.msk [vmem:[#allocation2] sm:$0x3] %vm18_vm3, %v360_v22  ;;  %v205_v24 = vand.u32 127, %v204_v23  ;;  %v207_v25 = vshrl.u32 %v204_v23, 7 }
   0x9   :  { %323 = vmatpush3.bf16.msra.mxu0 %v320_v8  ;;  %v210_v26 = vadd.s32 4294967288, %v205_v24  ;;  %v208_v28 = vsub.s32 %v205_v24, %v207_v25 }
   0xa   :  { %331 = vmatpush3.bf16.msra.mxu1 %v328_v12 }
   0xb   :  { %v213_v30 = vsub.s32 %v210_v26, %v207_v25 }
   0xc   :  { %303 = vmatmul.mubr.msk.f32.vlgmr.msra.gmra.mrb[0].mxu0 %vm26_vm0, %v21_v13 }
   0xd   :  { %314 = vmatmul.mubr.msk.f32.vlgmr.msra.gmra.mrb[0].mxu1 %vm26_vm0, %v21_v13 }
   0xe   :  { %v195_v34 = vld [vmem:[#allocation2] sm:$0x1]  ;;  %v221_v37 = vld [vmem:[#allocation2 + $0x1] sm:$0x1] }
  0xdf   :  { %v304_v14 = vpop.f32.mrb[0].mxu0 }
  0xe0   :  { %111 = vst.msk [vmem:[%s444_s2 + $0x8] sm:$0x7] %vm110_vm1, %v304_v14  ;;  %v315_v15 = vpop.f32.mrb[0].mxu1  ;;  %v99_v16 = vpop.f32.mrb[1].mxu0  ;;  %v199_v20 = vsel %vm110_vm1, %v304_v14, 0.0 }
  0xe1   :  { %281 = vst.msk [vmem:[%s444_s2 + $0x18] sm:$0x7] %vm110_vm1, %v315_v15  ;;  %v183_v17 = vpop.f32.mrb[1].mxu1  ;;  %v196_v18 = vsel %vm108_vm2, %v99_v16, 0.0  ;;  %v225_v21 = vsel %vm110_vm1, %v315_v15, 0.0 }
  0xe2   :  { %109 = vst.msk [vmem:[%s444_s2] sm:$0xff] %vm108_vm2, %v99_v16  ;;  %280 = vst.msk [vmem:[%s444_s2 + $0x10] sm:$0xff] %vm108_vm2, %v183_v17  ;;  %v222_v19 = vsel %vm108_vm2, %v183_v17, 0.0  ;;  %197 = vadd.xlane.f32.xlu0 %v196_v18  ;;  %s361_s2 = smov [#allocation3]  }
  0xe3   :  { %223 = vadd.xlane.f32.xlu1 %v222_v19  ;;  %s259_s11 = sshll.u32 %s361_s2, 4  ;;  %s260_s11 = int_to_ptr.vmem [resolvable:$true] %s259_s11 }
  0xe4   :  { %s336_s12 = scalar_lea.vmem %s260_s11, 32  ;;  %p341_p1 = scmp.lt.s32.totalorder %s260_s11, %s260_s11 }
  0xe5   :  { %p337_p0 = scmp.ne.s32.totalorder %s260_s11, %s336_s12  ;;  %p342_p2 = scmp.lt.s32.totalorder %s336_s12, %s336_s12 }
  0xe6   :  { %200 = vadd.xlane.f32.xlu0 %v199_v20 }
  0xe7   :  { %226 = vadd.xlane.f32.xlu1 %v225_v21  ;;  %p343_p3 = por %p342_p2, %p341_p1 }
  0xe9   :  { %p344_p4 = pnand %p343_p3, %p337_p0 }
 0x16f   :  { %v198_v27 = vpop.xlane.xlu0 %197 }
 0x170   :  { %v224_v29 = vpop.xlane.xlu1 %223  ;;  %v209_v32 = vrot.slane %v198_v27, %v208_v28 }
 0x171   :  { %v233_v36 = vrot.slane %v224_v29, %v208_v28 }
 0x173   :  { %v201_v31 = vpop.xlane.xlu0 %200 }
 0x174   :  { %v227_v33 = vpop.xlane.xlu1 %226  ;;  %v214_v35 = vrot.slane %v201_v31, %v213_v30 }
 0x175   :  { %v237_v38 = vrot.slane %v227_v33, %v213_v30 }
 0x176   :  { %v216_v39 = vsel %vm215_vm4, %v214_v35, %v209_v32 }
 0x177   :  { %v238_v40 = vsel %vm215_vm4, %v237_v38, %v233_v36  ;;  %v218_v41 = vadd.f32 %v216_v39, %v195_v34 }
 0x178   :  { %v240_v42 = vadd.f32 %v238_v40, %v221_v37 }
 0x179   :  { %220 = vst.msk [vmem:[#allocation2] sm:$0x1] %vm219_vm5, %v218_v41 }
 0x17a   :  { %241 = vst.msk [vmem:[#allocation2 + $0x1] sm:$0x1] %vm219_vm5, %v240_v42 }
 0x180   :  { %v245_v43 = vld [vmem:[#allocation2] sm:$0x1] }
 0x181   :  { %v246_v44 = vmul.f32 0.015625, %v245_v43  ;;  %v248_v45 = vld [vmem:[#allocation2 + $0x1] sm:$0x1] }
 0x182   :  { %v249_v46 = vmul.f32 0.015625, %v248_v45 }
 0x183   :  { %247 = vst.msk [vmem:[#allocation3] sm:$0x1] %vm219_vm5, %v246_v44 }
 0x184   :  { %251 = vst.msk [vmem:[#allocation3 + $0x1] sm:$0x1] %vm219_vm5, %v249_v46 }
 0x185   :  { %347 = shalt.err (!%p344_p4)
}
 0x186   :  { %s348_s15 = scalar_lea.hbm %s445_s3, 32 }
 0x187   :  { %p349_p5 = scmp.ne.s32.totalorder %s445_s3, %s348_s15  ;;  %p352_p6 = scmp.lt.u32.totalorder %s348_s15, %s445_s3 }
 0x189   :  { %p354_p7 = pnand %p352_p6, %p349_p5 }
 0x18b   :  { %357 = shalt.err (!%p354_p7)
}
 0x18c   :  { %s362_s20 = smov 16   ;;  %s363_s21 = smov 1  }
 0x18d   :  { %265 = dma.vmem_to_hbm [thread:$0]  %s260_s11, 32, %s445_s3, [#allocation4], %s362_s20, %s362_s20, %s363_s21  }
 0x18e   :  { %358 = dma.done.wait [#allocation4], 32  }
 0x18f   :  { %359 = vsyncadd [#allocation4], 4294967264 }
 0x190   :  { %271 = vsyncpa [#allocation4], 1 }

</bundles_post_ra>
